<compile_context>
chip_gen: v5e
topology: v5e:2x2
jax: 0.10.0
libtpu: 0.0.40
codegen_flags: <defaults>
</compile_context>

<pallas_src>
import jax
import jax.numpy as jnp
from jax.experimental import pallas as pl
from jax.experimental.pallas import tpu as pltpu

BN_EPS = 1e-5


# --------------------------------- helpers ---------------------------------- #

def _round_up(v, m):
    return (v + m - 1) // m * m


def _pad_axis(a, axis, new_size):
    if a.shape[axis] == new_size:
        return a
    widths = [(0, 0)] * a.ndim
    widths[axis] = (0, new_size - a.shape[axis])
    return jnp.pad(a, widths)


def _replicated_spec(arr):
    nd = arr.ndim
    return pl.BlockSpec(arr.shape, lambda i, _nd=nd: (0,) * _nd)


def _fold_bn(w, bn):
    """Fold eval-mode BN into a conv weight. w: (Cout, Cin, k) PyTorch layout.
    Returns ((k, Cin, Cout) BN-scaled weight, (Cout,) shift)."""
    scale = bn["gamma"] * jax.lax.rsqrt(bn["var"] + BN_EPS)
    shift = bn["beta"] - bn["mean"] * scale
    w_f = jnp.transpose(w, (2, 1, 0)) * scale[None, None, :]
    return w_f, shift


def _pick_batch_tile(n, lp, target_rows=256):
    """Largest divisor of n so that B_tile*lp stays near the MXU-friendly target."""
    best = 1
    for d in range(1, n + 1):
        if n % d == 0 and d * lp <= max(target_rows, lp):
            best = d
    return best


# ------------------------------- fused kernel -------------------------------- #

def _make_bottleneck_kernel(*, stride, lp, l_real, has_downsample):
    """One grid program == B_tile batch samples, whole block fused in VMEM."""

    def kernel(*refs):
        x_ref, w1_ref, b1_ref, w2_ref, b2_ref, w3_ref, b3_ref = refs[:7]
        rest = list(refs[7:])
        if has_downsample:
            wd_ref, bd_ref = rest[0], rest[1]
            rest = rest[2:]
        o_ref = rest[0]
        scr = rest[1:]
        h2_scr = scr[0] if stride > 1 else None
        x_scr = scr[1] if (stride > 1 and has_downsample) else None

        x = x_ref[...]                                   # (M, Cin_p) bf16
        m = x.shape[0]                                   # static
        m_out = m // stride

        # ---- conv1 (1x1) + bn1 + relu ---- #
        h1 = jnp.dot(x, w1_ref[...], preferred_element_type=jnp.float32)
        h1 = jnp.maximum(h1 + b1_ref[...], 0.0)          # (M, Cmid_p) f32

        # ---- conv2 (k=3, pad=1) + bn2 + relu ---- #
        # In-kernel im2col: taps are sublane rotates (XLU). The roll wraps across
        # the packed samples, so masks use the per-sample row index (row % lp);
        # the same masks implement the conv's zero padding at l=0 / l=l_real-1.
        l_idx = jax.lax.broadcasted_iota(jnp.int32, h1.shape, 0) % lp
        prev = jnp.where(l_idx == 0, 0.0, pltpu.roll(h1, shift=1, axis=0))
        nxt = jnp.where(l_idx == l_real - 1, 0.0,
                        pltpu.roll(h1, shift=m - 1, axis=0))
        taps = jnp.concatenate(
            [prev.astype(jnp.bfloat16), h1.astype(jnp.bfloat16),
             nxt.astype(jnp.bfloat16)], axis=-1)         # (M, 3*Cmid_p)
        h2 = jnp.dot(taps, w2_ref[...], preferred_element_type=jnp.float32)
        h2 = jnp.maximum(h2 + b2_ref[...], 0.0)          # (M, Cmid_p) f32

        if stride > 1:
            # Stride as a free strided sublane read (no selection matmul).
            h2_scr[...] = h2
            h2 = h2_scr[pl.ds(0, m_out, stride=stride), :]
        h2 = h2.astype(jnp.bfloat16)                     # (M_out, Cmid_p)

        # ---- conv3 (1x1) + bn3 ---- #
        out = jnp.dot(h2, w3_ref[...], preferred_element_type=jnp.float32)
        out = out + b3_ref[...]                          # (M_out, Cout_p) f32

        # ---- identity / downsample path (fused, no extra launch) ---- #
        if has_downsample:
            if stride > 1:
                x_scr[...] = x.astype(jnp.float32)
                xi = x_scr[pl.ds(0, m_out, stride=stride), :].astype(jnp.bfloat16)
            else:
                xi = x
            identity = jnp.dot(xi, wd_ref[...],
                               preferred_element_type=jnp.float32) + bd_ref[...]
        else:
            identity = x.astype(jnp.float32)             # stride==1, Cin_p == Cout_p

        o_ref[...] = jnp.maximum(out + identity, 0.0).astype(o_ref.dtype)

    return kernel


# ------------------------------- host wrapper -------------------------------- #

def bottleneck_forward(x, params):
    """Bottleneck forward. x: (N, C_in, L) float32 in PyTorch NCL layout.
    Returns (N, 4*out_channels, L_out) float32."""
    stride = int(params["stride"])
    has_downsample = "down_conv" in params
    n, cin, l_in = x.shape
    cmid = params["conv1"].shape[0]
    cout = params["conv3"].shape[0]
    if not has_downsample:
        assert stride == 1 and cin == cout, "identity shortcut requires matching shapes"

    cin_p = _round_up(cin, 128)
    cmid_p = _round_up(cmid, 128)
    cout_p = _round_up(cout, 128)
    lp = _round_up(l_in, 8 * stride)          # divisible by 8 and stride; lp//stride % 8 == 0
    l_out = (l_in - 1) // stride + 1
    l_out_blk = lp // stride

    b_tile = _pick_batch_tile(n, lp)
    g = n // b_tile
    m_tile = b_tile * lp
    m_out_tile = b_tile * l_out_blk

    # ---- entry layout transform: NCL -> flattened padded channels-last bf16 ---- #
    x_nlc = jnp.transpose(x, (0, 2, 1))
    x_pad = _pad_axis(_pad_axis(x_nlc, 1, lp), 2, cin_p).astype(jnp.bfloat16)
    x_flat = x_pad.reshape(n * lp, cin_p)

    # fold BN into weights, zero-pad to lane-dense channel counts, bf16 MXU operands
    w1, b1 = _fold_bn(params["conv1"], params["bn1"])
    w1 = _pad_axis(_pad_axis(w1[0], 0, cin_p), 1, cmid_p).astype(jnp.bfloat16)
    b1 = _pad_axis(b1, 0, cmid_p)[None, :]
    w2, b2 = _fold_bn(params["conv2"], params["bn2"])
    w2 = _pad_axis(_pad_axis(w2, 1, cmid_p), 2, cmid_p)               # (3, Cmid_p, Cmid_p)
    w2 = w2.reshape(3 * cmid_p, cmid_p).astype(jnp.bfloat16)          # taps packed into K
    b2 = _pad_axis(b2, 0, cmid_p)[None, :]
    w3, b3 = _fold_bn(params["conv3"], params["bn3"])
    w3 = _pad_axis(_pad_axis(w3[0], 0, cmid_p), 1, cout_p).astype(jnp.bfloat16)
    b3 = _pad_axis(b3, 0, cout_p)[None, :]

    inputs = [x_flat, w1, b1, w2, b2, w3, b3]
    in_specs = [pl.BlockSpec((m_tile, cin_p), lambda i: (i, 0))]
    in_specs += [_replicated_spec(a) for a in (w1, b1, w2, b2, w3, b3)]

    if has_downsample:
        wd, bd = _fold_bn(params["down_conv"], params["down_bn"])
        wd = _pad_axis(_pad_axis(wd[0], 0, cin_p), 1, cout_p).astype(jnp.bfloat16)
        bd = _pad_axis(bd, 0, cout_p)[None, :]
        inputs += [wd, bd]
        in_specs += [_replicated_spec(wd), _replicated_spec(bd)]

    scratch_shapes = []
    if stride > 1:
        scratch_shapes.append(pltpu.VMEM((m_tile, cmid_p), jnp.float32))
        if has_downsample:
            scratch_shapes.append(pltpu.VMEM((m_tile, cin_p), jnp.float32))

    # Per-generation VMEM budget (v7x 64 MiB vs v5e/v6e 128 MiB).
    try:
        vmem_cap = pltpu.get_tpu_info().vmem_capacity_bytes
    except Exception:
        vmem_cap = 64 * 1024 * 1024
    vmem_limit = int(max(32 * 1024 * 1024,
                         min(vmem_cap * 3 // 4, 100 * 1024 * 1024)))

    kernel = _make_bottleneck_kernel(stride=stride, lp=lp, l_real=l_in,
                                     has_downsample=has_downsample)

    out_flat = pl.pallas_call(
        kernel,
        out_shape=jax.ShapeDtypeStruct((n * l_out_blk, cout_p), jnp.float32),
        grid=(g,),
        in_specs=in_specs,
        out_specs=pl.BlockSpec((m_out_tile, cout_p), lambda i: (i, 0)),
        scratch_shapes=scratch_shapes,
        compiler_params=pltpu.CompilerParams(
            dimension_semantics=("parallel",),
            vmem_limit_bytes=vmem_limit,
        ),
    )(*inputs)

    # ---- exit layout transform: packed -> NCL (once per network in practice) ---- #
    out = out_flat.reshape(n, l_out_blk, cout_p)[:, :l_out, :cout]
    return jnp.transpose(out, (0, 2, 1))


# ------------------------- reference (plain JAX, f32) ------------------------- #

def _reference_forward(x, p):
    def bn(h, b):
        scale = b["gamma"] / jnp.sqrt(b["var"] + BN_EPS)
        shift = b["beta"] - b["mean"] * scale
        return h * scale[None, :, None] + shift[None, :, None]

    def conv(h, w, stride, pad):
        return jax.lax.conv_general_dilated(
            h, w, window_strides=(stride,), padding=[(pad, pad)],
            dimension_numbers=("NCH", "OIH", "NCH"))

    out = jax.nn.relu(bn(conv(x, p["conv1"], 1, 0), p["bn1"]))
    out = jax.nn.relu(bn(conv(out, p["conv2"], p["stride"], 1), p["bn2"]))
    out = bn(conv(out, p["conv3"], 1, 0), p["bn3"])
    if "down_conv" in p:
        identity = bn(conv(x, p["down_conv"], p["stride"], 0), p["down_bn"])
    else:
        identity = x
    return jax.nn.relu(out + identity)


# ------------------------------- param init ----------------------------------- #

def _init_conv(key, cout, cin, k):
    fan_in = cin * k
    return jax.random.normal(key, (cout, cin, k), jnp.float32) * (1.0 / fan_in ** 0.5)


def _init_bn(key, c):
    k1, k2, k3, k4 = jax.random.split(key, 4)
    return dict(
        gamma=1.0 + 0.1 * jax.random.normal(k1, (c,), jnp.float32),
        beta=0.1 * jax.random.normal(k2, (c,), jnp.float32),
        mean=0.1 * jax.random.normal(k3, (c,), jnp.float32),
        var=jnp.abs(jax.random.normal(k4, (c,), jnp.float32)) + 0.5,
    )


def init_bottleneck_params(key, in_channels, out_channels, stride=1):
    expansion = 4
    keys = jax.random.split(key, 8)
    p = {
        "stride": stride,
        "conv1": _init_conv(keys[0], out_channels, in_channels, 1),
        "bn1": _init_bn(keys[1], out_channels),
        "conv2": _init_conv(keys[2], out_channels, out_channels, 3),
        "bn2": _init_bn(keys[3], out_channels),
        "conv3": _init_conv(keys[4], out_channels * expansion, out_channels, 1),
        "bn3": _init_bn(keys[5], out_channels * expansion),
    }
    if stride != 1 or in_channels != out_channels * expansion:
        p["down_conv"] = _init_conv(keys[6], out_channels * expansion, in_channels, 1)
        p["down_bn"] = _init_bn(keys[7], out_channels * expansion)
    return p


# ----------------------------------- main -------------------------------------- #

if __name__ == "__main__":
    key = jax.random.PRNGKey(0)
    kp1, kx1, kp2, kx2 = jax.random.split(key, 4)

    # Case 1: stride=2 with 1x1-conv downsample (in=64, mid=32, out=128), L=16, N=2.
    p1 = init_bottleneck_params(kp1, in_channels=64, out_channels=32, stride=2)
    x1 = jax.random.normal(kx1, (2, 64, 16), jnp.float32)
    y1 = jax.block_until_ready(bottleneck_forward(x1, p1))
    r1 = _reference_forward(x1, p1)
    assert y1.shape == (2, 128, 8), y1.shape

    # Case 2: stride=1, identity shortcut (in=128, mid=32, out=128), L=16, N=2.
    p2 = init_bottleneck_params(kp2, in_channels=128, out_channels=32, stride=1)
    x2 = jax.random.normal(kx2, (2, 128, 16), jnp.float32)
    y2 = jax.block_until_ready(bottleneck_forward(x2, p2))
    r2 = _reference_forward(x2, p2)
    assert y2.shape == (2, 128, 16), y2.shape

    for y, r in ((y1, r1), (y2, r2)):
        assert bool(jnp.all(jnp.isfinite(y)))
        err = float(jnp.max(jnp.abs(y - r)))
        tol = 3e-2 + 5e-2 * float(jnp.max(jnp.abs(r)))   # bf16 MXU operands + bf16 act I/O
        assert err <= tol, (err, tol)

    print("KERNEL_OK")
</pallas_src>

<mosaic_0001>
module attributes {stable_mosaic.version = 11 : i64} {
  func.func @kernel(%arg0: i32, %arg1: memref<32x128xbf16, #tpu.memory_space<vmem>>, %arg2: memref<128x128xbf16, #tpu.memory_space<vmem>>, %arg3: memref<1x128xf32, #tpu.memory_space<vmem>>, %arg4: memref<384x128xbf16, #tpu.memory_space<vmem>>, %arg5: memref<1x128xf32, #tpu.memory_space<vmem>>, %arg6: memref<128x128xbf16, #tpu.memory_space<vmem>>, %arg7: memref<1x128xf32, #tpu.memory_space<vmem>>, %arg8: memref<128x128xbf16, #tpu.memory_space<vmem>>, %arg9: memref<1x128xf32, #tpu.memory_space<vmem>>, %arg10: memref<16x128xf32, #tpu.memory_space<vmem>>, %arg11: memref<32x128xf32, #tpu.memory_space<vmem>>, %arg12: memref<32x128xf32, #tpu.memory_space<vmem>>) attributes {dimension_semantics = [#tpu.dimension_semantics<parallel>], iteration_bounds = array<i64: 1>, scalar_prefetch = 0 : i64, scratch_operands = 2 : i64, tpu.core_type = #tpu.core_type<tc>, window_params = [{transform_indices = @transform_0, window_bounds = array<i64: 32, 128>}, {pipeline_mode = #tpu.pipeline_mode<synchronous>, transform_indices = @transform_1, window_bounds = array<i64: 128, 128>}, {pipeline_mode = #tpu.pipeline_mode<synchronous>, transform_indices = @transform_2, window_bounds = array<i64: 1, 128>}, {pipeline_mode = #tpu.pipeline_mode<synchronous>, transform_indices = @transform_3, window_bounds = array<i64: 384, 128>}, {pipeline_mode = #tpu.pipeline_mode<synchronous>, transform_indices = @transform_4, window_bounds = array<i64: 1, 128>}, {pipeline_mode = #tpu.pipeline_mode<synchronous>, transform_indices = @transform_5, window_bounds = array<i64: 128, 128>}, {pipeline_mode = #tpu.pipeline_mode<synchronous>, transform_indices = @transform_6, window_bounds = array<i64: 1, 128>}, {pipeline_mode = #tpu.pipeline_mode<synchronous>, transform_indices = @transform_7, window_bounds = array<i64: 128, 128>}, {pipeline_mode = #tpu.pipeline_mode<synchronous>, transform_indices = @transform_8, window_bounds = array<i64: 1, 128>}, {transform_indices = @transform_9, window_bounds = array<i64: 16, 128>}]} {
    %c0 = arith.constant 0 : index
    %c0_0 = arith.constant 0 : index
    %0 = vector.load %arg1[%c0, %c0_0] : memref<32x128xbf16, #tpu.memory_space<vmem>>, vector<32x128xbf16>
    %c0_1 = arith.constant 0 : index
    %c0_2 = arith.constant 0 : index
    %1 = vector.load %arg2[%c0_1, %c0_2] : memref<128x128xbf16, #tpu.memory_space<vmem>>, vector<128x128xbf16>
    %cst = arith.constant dense<0.000000e+00> : vector<32x128xf32>
    %2 = tpu.matmul %0, %1, %cst {dimension_numbers = #tpu.dot_dimension_numbers<[1], [0], [0], [1], [0, 0, 1, 1], [], []>} : vector<32x128xbf16>, vector<128x128xbf16>, vector<32x128xf32> -> vector<32x128xf32>
    %c0_3 = arith.constant 0 : index
    %c0_4 = arith.constant 0 : index
    %3 = vector.load %arg3[%c0_3, %c0_4] : memref<1x128xf32, #tpu.memory_space<vmem>>, vector<1x128xf32>
    %4 = vector.broadcast %3 : vector<1x128xf32> to vector<32x128xf32>
    %5 = arith.addf %2, %4 : vector<32x128xf32>
    %cst_5 = arith.constant 0.000000e+00 : f32
    %6 = vector.broadcast %cst_5 : f32 to vector<32x128xf32>
    %7 = arith.maximumf %5, %6 : vector<32x128xf32>
    %8 = tpu.iota {dimensions = array<i32: 0>} : vector<32x128xi32>
    %c16_i32 = arith.constant 16 : i32
    %c0_i32 = arith.constant 0 : i32
    %9 = arith.cmpi eq, %c16_i32, %c0_i32 : i32
    %c1_i32 = arith.constant 1 : i32
    %10 = arith.select %9, %c1_i32, %c16_i32 : i32
    %11 = vector.broadcast %10 : i32 to vector<32x128xi32>
    %12 = arith.remsi %8, %11 : vector<32x128xi32>
    %c0_i32_6 = arith.constant 0 : i32
    %13 = vector.broadcast %c0_i32_6 : i32 to vector<32x128xi32>
    %14 = arith.cmpi ne, %12, %13 : vector<32x128xi32>
    %c0_i32_7 = arith.constant 0 : i32
    %15 = vector.broadcast %c0_i32_7 : i32 to vector<32x128xi32>
    %16 = arith.cmpi slt, %12, %15 : vector<32x128xi32>
    %c0_i32_8 = arith.constant 0 : i32
    %17 = arith.cmpi slt, %10, %c0_i32_8 : i32
    %18 = vector.broadcast %17 : i1 to vector<32x128xi1>
    %19 = vector.broadcast %18 : vector<32x128xi1> to vector<32x128xi1>
    %20 = arith.xori %16, %19 : vector<32x128xi1>
    %21 = arith.andi %20, %14 : vector<32x128xi1>
    %22 = vector.broadcast %10 : i32 to vector<32x128xi32>
    %23 = arith.addi %12, %22 : vector<32x128xi32>
    %24 = arith.select %21, %23, %12 : vector<32x128xi1>, vector<32x128xi32>
    %c0_i32_9 = arith.constant 0 : i32
    %25 = vector.broadcast %c0_i32_9 : i32 to vector<32x128xi32>
    %26 = arith.cmpi eq, %24, %25 : vector<32x128xi32>
    %c1_i32_10 = arith.constant 1 : i32
    %27 = tpu.dynamic_rotate %7 by %c1_i32_10 dim 0 : vector<32x128xf32>, i32 -> vector<32x128xf32>
    %cst_11 = arith.constant 0.000000e+00 : f32
    %28 = vector.broadcast %cst_11 : f32 to vector<32x128xf32>
    %29 = arith.select %26, %28, %27 : vector<32x128xi1>, vector<32x128xf32>
    %c15_i32 = arith.constant 15 : i32
    %30 = vector.broadcast %c15_i32 : i32 to vector<32x128xi32>
    %31 = arith.cmpi eq, %24, %30 : vector<32x128xi32>
    %c31_i32 = arith.constant 31 : i32
    %32 = tpu.dynamic_rotate %7 by %c31_i32 dim 0 : vector<32x128xf32>, i32 -> vector<32x128xf32>
    %cst_12 = arith.constant 0.000000e+00 : f32
    %33 = vector.broadcast %cst_12 : f32 to vector<32x128xf32>
    %34 = arith.select %31, %33, %32 : vector<32x128xi1>, vector<32x128xf32>
    %35 = arith.truncf %29 : vector<32x128xf32> to vector<32x128xbf16>
    %36 = arith.truncf %7 : vector<32x128xf32> to vector<32x128xbf16>
    %37 = arith.truncf %34 : vector<32x128xf32> to vector<32x128xbf16>
    %38 = tpu.concatenate %35, %36, %37 in 1 : vector<32x128xbf16>, vector<32x128xbf16>, vector<32x128xbf16> -> vector<32x384xbf16>
    %c0_13 = arith.constant 0 : index
    %c0_14 = arith.constant 0 : index
    %39 = vector.load %arg4[%c0_13, %c0_14] : memref<384x128xbf16, #tpu.memory_space<vmem>>, vector<384x128xbf16>
    %cst_15 = arith.constant dense<0.000000e+00> : vector<32x128xf32>
    %40 = tpu.matmul %38, %39, %cst_15 {dimension_numbers = #tpu.dot_dimension_numbers<[1], [0], [0], [1], [0, 0, 1, 1], [], []>} : vector<32x384xbf16>, vector<384x128xbf16>, vector<32x128xf32> -> vector<32x128xf32>
    %c0_16 = arith.constant 0 : index
    %c0_17 = arith.constant 0 : index
    %41 = vector.load %arg5[%c0_16, %c0_17] : memref<1x128xf32, #tpu.memory_space<vmem>>, vector<1x128xf32>
    %42 = vector.broadcast %41 : vector<1x128xf32> to vector<32x128xf32>
    %43 = arith.addf %40, %42 : vector<32x128xf32>
    %cst_18 = arith.constant 0.000000e+00 : f32
    %44 = vector.broadcast %cst_18 : f32 to vector<32x128xf32>
    %45 = arith.maximumf %43, %44 : vector<32x128xf32>
    %c0_19 = arith.constant 0 : index
    %c0_20 = arith.constant 0 : index
    %46 = vector.load %arg11[%c0_19, %c0_20] : memref<32x128xf32, #tpu.memory_space<vmem>>, vector<32x128xf32>
    tpu.vector_store %arg11[%c0_19, %c0_20], %45 {strides = array<i32>} : memref<32x128xf32, #tpu.memory_space<vmem>>, vector<32x128xf32>,
    %c0_21 = arith.constant 0 : index
    %c0_22 = arith.constant 0 : index
    %47 = tpu.strided_load %arg11[%c0_21, %c0_22] {strides = array<i32: 2, 1>} : memref<32x128xf32, #tpu.memory_space<vmem>>, vector<16x128xf32>
    %48 = arith.truncf %47 : vector<16x128xf32> to vector<16x128xbf16>
    %c0_23 = arith.constant 0 : index
    %c0_24 = arith.constant 0 : index
    %49 = vector.load %arg6[%c0_23, %c0_24] : memref<128x128xbf16, #tpu.memory_space<vmem>>, vector<128x128xbf16>
    %cst_25 = arith.constant dense<0.000000e+00> : vector<16x128xf32>
    %50 = tpu.matmul %48, %49, %cst_25 {dimension_numbers = #tpu.dot_dimension_numbers<[1], [0], [0], [1], [0, 0, 1, 1], [], []>} : vector<16x128xbf16>, vector<128x128xbf16>, vector<16x128xf32> -> vector<16x128xf32>
    %c0_26 = arith.constant 0 : index
    %c0_27 = arith.constant 0 : index
    %51 = vector.load %arg7[%c0_26, %c0_27] : memref<1x128xf32, #tpu.memory_space<vmem>>, vector<1x128xf32>
    %52 = vector.broadcast %51 : vector<1x128xf32> to vector<16x128xf32>
    %53 = arith.addf %50, %52 : vector<16x128xf32>
    %54 = arith.extf %0 : vector<32x128xbf16> to vector<32x128xf32>
    %c0_28 = arith.constant 0 : index
    %c0_29 = arith.constant 0 : index
    %55 = vector.load %arg12[%c0_28, %c0_29] : memref<32x128xf32, #tpu.memory_space<vmem>>, vector<32x128xf32>
    tpu.vector_store %arg12[%c0_28, %c0_29], %54 {strides = array<i32>} : memref<32x128xf32, #tpu.memory_space<vmem>>, vector<32x128xf32>,
    %c0_30 = arith.constant 0 : index
    %c0_31 = arith.constant 0 : index
    %56 = tpu.strided_load %arg12[%c0_30, %c0_31] {strides = array<i32: 2, 1>} : memref<32x128xf32, #tpu.memory_space<vmem>>, vector<16x128xf32>
    %57 = arith.truncf %56 : vector<16x128xf32> to vector<16x128xbf16>
    %c0_32 = arith.constant 0 : index
    %c0_33 = arith.constant 0 : index
    %58 = vector.load %arg8[%c0_32, %c0_33] : memref<128x128xbf16, #tpu.memory_space<vmem>>, vector<128x128xbf16>
    %cst_34 = arith.constant dense<0.000000e+00> : vector<16x128xf32>
    %59 = tpu.matmul %57, %58, %cst_34 {dimension_numbers = #tpu.dot_dimension_numbers<[1], [0], [0], [1], [0, 0, 1, 1], [], []>} : vector<16x128xbf16>, vector<128x128xbf16>, vector<16x128xf32> -> vector<16x128xf32>
    %c0_35 = arith.constant 0 : index
    %c0_36 = arith.constant 0 : index
    %60 = vector.load %arg9[%c0_35, %c0_36] : memref<1x128xf32, #tpu.memory_space<vmem>>, vector<1x128xf32>
    %61 = vector.broadcast %60 : vector<1x128xf32> to vector<16x128xf32>
    %62 = arith.addf %59, %61 : vector<16x128xf32>
    %63 = arith.addf %53, %62 : vector<16x128xf32>
    %cst_37 = arith.constant 0.000000e+00 : f32
    %64 = vector.broadcast %cst_37 : f32 to vector<16x128xf32>
    %65 = arith.maximumf %63, %64 : vector<16x128xf32>
    %c0_38 = arith.constant 0 : index
    %c0_39 = arith.constant 0 : index
    %66 = vector.load %arg10[%c0_38, %c0_39] : memref<16x128xf32, #tpu.memory_space<vmem>>, vector<16x128xf32>
    tpu.vector_store %arg10[%c0_38, %c0_39], %65 {strides = array<i32>} : memref<16x128xf32, #tpu.memory_space<vmem>>, vector<16x128xf32>,
    return
  }
  func.func @transform_0(%arg0: i32) -> (i32, i32) {
    %c0_i32 = arith.constant 0 : i32
    %c0_i32_0 = arith.constant 0 : i32
    return %arg0, %c0_i32 : i32, i32
  }
  func.func @transform_1(%arg0: i32) -> (i32, i32) {
    %c0_i32 = arith.constant 0 : i32
    %c0_i32_0 = arith.constant 0 : i32
    %c0_i32_1 = arith.constant 0 : i32
    return %c0_i32, %c0_i32_0 : i32, i32
  }
  func.func @transform_2(%arg0: i32) -> (i32, i32) {
    %c0_i32 = arith.constant 0 : i32
    %c0_i32_0 = arith.constant 0 : i32
    %c0_i32_1 = arith.constant 0 : i32
    return %c0_i32, %c0_i32_0 : i32, i32
  }
  func.func @transform_3(%arg0: i32) -> (i32, i32) {
    %c0_i32 = arith.constant 0 : i32
    %c0_i32_0 = arith.constant 0 : i32
    %c0_i32_1 = arith.constant 0 : i32
    return %c0_i32, %c0_i32_0 : i32, i32
  }
  func.func @transform_4(%arg0: i32) -> (i32, i32) {
    %c0_i32 = arith.constant 0 : i32
    %c0_i32_0 = arith.constant 0 : i32
    %c0_i32_1 = arith.constant 0 : i32
    return %c0_i32, %c0_i32_0 : i32, i32
  }
  func.func @transform_5(%arg0: i32) -> (i32, i32) {
    %c0_i32 = arith.constant 0 : i32
    %c0_i32_0 = arith.constant 0 : i32
    %c0_i32_1 = arith.constant 0 : i32
    return %c0_i32, %c0_i32_0 : i32, i32
  }
  func.func @transform_6(%arg0: i32) -> (i32, i32) {
    %c0_i32 = arith.constant 0 : i32
    %c0_i32_0 = arith.constant 0 : i32
    %c0_i32_1 = arith.constant 0 : i32
    return %c0_i32, %c0_i32_0 : i32, i32
  }
  func.func @transform_7(%arg0: i32) -> (i32, i32) {
    %c0_i32 = arith.constant 0 : i32
    %c0_i32_0 = arith.constant 0 : i32
    %c0_i32_1 = arith.constant 0 : i32
    return %c0_i32, %c0_i32_0 : i32, i32
  }
  func.func @transform_8(%arg0: i32) -> (i32, i32) {
    %c0_i32 = arith.constant 0 : i32
    %c0_i32_0 = arith.constant 0 : i32
    %c0_i32_1 = arith.constant 0 : i32
    return %c0_i32, %c0_i32_0 : i32, i32
  }
  func.func @transform_9(%arg0: i32) -> (i32, i32) {
    %c0_i32 = arith.constant 0 : i32
    %c0_i32_0 = arith.constant 0 : i32
    return %arg0, %c0_i32 : i32, i32
  }
}

</mosaic_0001>

<bundles_post_ra>
// kernel: tpu_custom_call.1
= control target key start
LH: loop header
LB: loop body
LE: loop exit
PB: predicated region body
PF: predicated region fallthrough
CT: control target
= control target key end

     0   :  { %14 = vsyncpa [#allocation5], 0  ;;  %s1357_s0 = inlined_call_operand.hbm [shape: bf16[32,128], index: 0, kind: input, shape index: {}]   ;;  %s1358_s1 = inlined_call_operand.hbm [shape: bf16[128,128], index: 1, kind: input, shape index: {}]   ;;  %s1359_s2 = inlined_call_operand.vmem [shape: f32[1,128], index: 2, kind: input, shape index: {}]   ;;  %s1360_s3 = inlined_call_operand.hbm [shape: bf16[384,128], index: 3, kind: input, shape index: {}]   ;;  %s1361_s4 = inlined_call_operand.vmem [shape: f32[1,128], index: 4, kind: input, shape index: {}]   ;;  %s1362_s5 = inlined_call_operand.hbm [shape: bf16[128,128], index: 5, kind: input, shape index: {}]   ;;  %s1363_s6 = inlined_call_operand.vmem [shape: f32[1,128], index: 6, kind: input, shape index: {}]   ;;  %s1364_s7 = inlined_call_operand.hbm [shape: bf16[128,128], index: 7, kind: input, shape index: {}]   ;;  %s1365_s8 = inlined_call_operand.vmem [shape: f32[1,128], index: 8, kind: input, shape index: {}]   ;;  %s1366_s9 = inlined_call_operand.hbm [shape: f32[16,128], index: 9, kind: output, shape index: {}]  }
   0x1   :  { %15 = vsyncpa [#allocation8], 0 }
   0x2   :  { %16 = vsyncpa [#allocation11], 0 }
   0x3   :  { %17 = vsyncpa [#allocation6], 0  ;;  %s35_s11 = sshll.u32 %s1358_s1, 4  ;;  %s1237_s12 = smov [#allocation7]   ;;  %s36_s11 = int_to_ptr.hbm [resolvable:$true] %s35_s11 }
   0x4   :  { %s37_s13 = sshll.u32 %s1237_s12, 4  ;;  %s65_s16 = sshll.u32 %s1362_s5, 4  ;;  %s38_s13 = int_to_ptr.vmem [resolvable:$true] %s37_s13  ;;  %s66_s16 = int_to_ptr.hbm [resolvable:$true] %s65_s16 }
   0x5   :  { %s1238_s17 = smov 64   ;;  %s1239_s18 = smov 4  }
   0x6   :  { %43 = dma.hbm_to_vmem [thread:$0]  %s36_s11, 1024, %s38_s13, [#allocation8], %s1238_s17, %s1238_s17, %s1239_s18  }
   0x7   :  { %s1240_s19 = smov [#allocation10]   ;;  %s22_s23 = sshll.u32 %s1357_s0, 4  ;;  %s23_s23 = int_to_ptr.hbm [resolvable:$true] %s22_s23 }
   0x8   :  { %s67_s20 = sshll.u32 %s1240_s19, 4  ;;  %s50_s25 = sshll.u32 %s1360_s3, 4  ;;  %s68_s20 = int_to_ptr.vmem [resolvable:$true] %s67_s20  ;;  %s51_s25 = int_to_ptr.hbm [resolvable:$true] %s50_s25 }
   0x9   :  { %73 = dma.hbm_to_vmem [thread:$0]  %s66_s16, 1024, %s68_s20, [#allocation11], %s1238_s17, %s1238_s17, %s1239_s18  }
   0xa   :  { %s1241_s26 = smov [#allocation4]   ;;  %s1242_s5 = smov [#allocation9]  }
   0xb   :  { %s24_s27 = sshll.u32 %s1241_s26, 4  ;;  %s52_s28 = sshll.u32 %s1242_s5, 4  ;;  %s25_s27 = int_to_ptr.vmem [resolvable:$true] %s24_s27  ;;  %s53_s28 = int_to_ptr.vmem [resolvable:$true] %s52_s28 }
   0xc   :  { %30 = dma.hbm_to_vmem [thread:$0]  %s23_s23, 256, %s25_s27, [#allocation5], %s1238_s17, %s1238_s17, %s1239_s18  }
   0xd   :  { %s80_s10 = sshll.u32 %s1364_s7, 4  ;;  %s1243_s0 = smov [#allocation12]   ;;  %s81_s10 = int_to_ptr.hbm [resolvable:$true] %s80_s10 }
   0xe   :  { %58 = dma.hbm_to_vmem [thread:$0]  %s51_s25, 3072, %s53_s28, [#allocation8], %s1238_s17, %s1238_s17, %s1239_s18  }
   0xf   :  { %s82_s11 = sshll.u32 %s1243_s0, 4  ;;  %s83_s11 = int_to_ptr.vmem [resolvable:$true] %s82_s11 }
  0x10   :  { %88 = dma.hbm_to_vmem [thread:$0]  %s81_s10, 1024, %s83_s11, [#allocation11], %s1238_s17, %s1238_s17, %s1239_s18  }
  0x11   :  { %1229 = dma.done.wait [#allocation5], 256  }
  0x12   :  { %1230 = vsyncadd [#allocation5], 4294967040 }
  0x13   :  { %1231 = dma.done.wait [#allocation8], 4096  }
  0x14   :  { %1232 = vsyncadd [#allocation8], 4294963200 }
  0x15   :  { %1233 = dma.done.wait [#allocation11], 2048  }
  0x16   :  { %1234 = vsyncadd [#allocation11], 4294965248  ;;  %v1030_v0 = vld [vmem:[#allocation7 + $0x38] sm:$0xff]  ;;  %v1029_v1 = vld [vmem:[#allocation7 + $0x30] sm:$0xff]  ;;  %v218_v38 = vlaneseq  ;;  %s1244_s16 = smov [#allocation13]   ;;  %s1246_s20 = smov 8  }
  0x17   :  { %195 = vmatpush.bf16.msra.mxu0 %v1030_v0  ;;  %v1028_v2 = vld [vmem:[#allocation7 + $0x28] sm:$0xff]  ;;  %v1027_v3 = vld [vmem:[#allocation7 + $0x20] sm:$0xff]  ;;  %v1026_v4 = vld [vmem:[#allocation7 + $0x18] sm:$0xff]  ;;  %s804_s17 = sshll.u32 %s1244_s16, 4  ;;  %s805_s17 = int_to_ptr.vmem [resolvable:$true] %s804_s17 }
  0x18   :  { %v1046_v5 = vld [vmem:[#allocation9 + $0x78] sm:$0xff]  ;;  %v1025_v6 = vld [vmem:[#allocation7 + $0x10] sm:$0xff]  ;;  %v1024_v8 = vld [vmem:[#allocation7 + $0x8] sm:$0xff]  ;;  %v1317_v43 = vshrl.u32 %v218_v38, 7 }
  0x19   :  { %568 = vmatpush.bf16.msra.mxu2 %v1046_v5  ;;  %v1045_v7 = vld [vmem:[#allocation9 + $0x70] sm:$0xff]  ;;  %v1044_v9 = vld [vmem:[#allocation9 + $0x68] sm:$0xff]  ;;  %v1023_v10 = vld [vmem:[#allocation7] sm:$0xff] }
  0x1a   :  { %v1021_v11 = vld [vmem:[#allocation4] sm:$0xff]  ;;  %v1022_v12 = vld [vmem:[#allocation4 + $0x8] sm:$0xff]  ;;  %v1043_v13 = vld [vmem:[#allocation9 + $0x60] sm:$0xff]  ;;  %v220_v45 = vadd.s32 8, %v1317_v43  ;;  %vm296_vm0 = vcmp.lt.s32.totalorder %v1317_v43, 7  ;;  %v222_v58 = vadd.s32 24, %v1317_v43 }
  0x1b   :  { %196 = vmatpush.bf16.msra.mxu0 %v1029_v1  ;;  %v1054_v14 = vld [vmem:[#allocation9 + $0xb8] sm:$0xff]  ;;  %v1053_v16 = vld [vmem:[#allocation9 + $0xb0] sm:$0xff]  ;;  %v1052_v19 = vld [vmem:[#allocation9 + $0xa8] sm:$0xff]  ;;  %vm279_vm2 = vcmp.lt.s32.totalorder %v1317_v43, 1  ;;  %v227_v0 = vand.u32 15, %v1317_v43 }
  0x1c   :  { %587 = vmatpush.bf16.msra.mxu3 %v1054_v14  ;;  %v1042_v15 = vld [vmem:[#allocation9 + $0x58] sm:$0xff]  ;;  %v1041_v18 = vld [vmem:[#allocation9 + $0x50] sm:$0xff]  ;;  %v1040_v21 = vld [vmem:[#allocation9 + $0x48] sm:$0xff]  ;;  %v234_v52 = vand.u32 15, %v220_v45 }
  0x1d   :  { %569 = vmatpush.bf16.msra.mxu2 %v1045_v7  ;;  %v1038_v17 = vld [vmem:[#allocation9 + $0x38] sm:$0xff]  ;;  %v1037_v20 = vld [vmem:[#allocation9 + $0x30] sm:$0xff]  ;;  %v1051_v22 = vld [vmem:[#allocation9 + $0xa0] sm:$0xff]  ;;  %vm271_vm3 = vcmp.eq.s32.totalorder %v227_v0, 0 }
  0x1e   :  { %549 = vmatpush.bf16.msra.mxu1 %v1038_v17  ;;  %v1036_v23 = vld [vmem:[#allocation9 + $0x28] sm:$0xff]  ;;  %v1039_v24 = vld [vmem:[#allocation9 + $0x40] sm:$0xff]  ;;  %v1050_v25 = vld [vmem:[#allocation9 + $0x98] sm:$0xff]  ;;  %vm289_vm1 = vcmp.eq.s32.totalorder %v234_v52, 15 }
  0x1f   :  { %197 = vmatpush.bf16.msra.mxu0 %v1028_v2  ;;  %v1035_v26 = vld [vmem:[#allocation9 + $0x20] sm:$0xff]  ;;  %v1049_v27 = vld [vmem:[#allocation9 + $0x90] sm:$0xff]  ;;  %v1034_v28 = vld [vmem:[#allocation9 + $0x18] sm:$0xff] }
  0x20   :  { %588 = vmatpush.bf16.msra.mxu3 %v1053_v16  ;;  %v1048_v29 = vld [vmem:[#allocation9 + $0x88] sm:$0xff]  ;;  %v1033_v30 = vld [vmem:[#allocation9 + $0x10] sm:$0xff]  ;;  %v1047_v31 = vld [vmem:[#allocation9 + $0x80] sm:$0xff] }
  0x21   :  { %570 = vmatpush.bf16.msra.mxu2 %v1044_v9  ;;  %v1032_v32 = vld [vmem:[#allocation9 + $0x8] sm:$0xff]  ;;  %v1081_v33 = vld [vmem:[%s1359_s2] ss:$0 sm:$0xff]  ;;  %v1031_v35 = vld [vmem:[#allocation9] sm:$0xff] }
  0x22   :  { %550 = vmatpush.bf16.msra.mxu1 %v1037_v20  ;;  %v1062_v45 = vld [vmem:[#allocation10 + $0x38] sm:$0xff]  ;;  %v111_v52 = vld [vmem:[#allocation4] sm:$0xff]   ;;  %v1063_v0 = vld [vmem:[#allocation12] sm:$0xff] }
  0x23   :  { %198 = vmatpush.bf16.msra.mxu0 %v1027_v3 }
  0x24   :  { %589 = vmatpush.bf16.msra.mxu3 %v1052_v19  ;;  %v221_v19 = vadd.s32 16, %v1317_v43  ;;  %v1067_v43 = vld [vmem:[#allocation12 + $0x20] sm:$0xff] }
  0x25   :  { %571 = vmatpush.bf16.msra.mxu2 %v1043_v13 }
  0x26   :  { %551 = vmatpush.bf16.msra.mxu1 %v1036_v23 }
  0x27   :  { %199 = vmatpush.bf16.msra.mxu0 %v1026_v4  ;;  %v248_v4 = vand.u32 15, %v222_v58  ;;  %v1058_v58 = vld [vmem:[#allocation10 + $0x18] sm:$0xff] }
  0x28   :  { %590 = vmatpush.bf16.msra.mxu3 %v1051_v22 }
  0x29   :  { %572 = vmatpush.bf16.msra.mxu2 %v1042_v15  ;;  %vm291_vm4 = vcmp.eq.s32.totalorder %v248_v4, 15 }
  0x2a   :  { %552 = vmatpush.bf16.msra.mxu1 %v1035_v26  ;;  %v241_v26 = vand.u32 15, %v221_v19 }
  0x2b   :  { %200 = vmatpush.bf16.msra.mxu0 %v1025_v6 }
  0x2c   :  { %591 = vmatpush.bf16.msra.mxu3 %v1050_v25  ;;  %vm273_vm5 = vcmp.eq.s32.totalorder %v241_v26, 0 }
  0x2d   :  { %573 = vmatpush.bf16.msra.mxu2 %v1041_v18 }
  0x2e   :  { %553 = vmatpush.bf16.msra.mxu1 %v1034_v28 }
  0x2f   :  { %201 = vmatpush.bf16.msra.mxu0 %v1024_v8 }
  0x30   :  { %592 = vmatpush.bf16.msra.mxu3 %v1049_v27 }
  0x31   :  { %574 = vmatpush.bf16.msra.mxu2 %v1040_v21 }
  0x32   :  { %554 = vmatpush.bf16.msra.mxu1 %v1033_v30 }
  0x33   :  { %202 = vmatpush.bf16.msra.mxu0 %v1023_v10 }
  0x34   :  { %593 = vmatpush.bf16.msra.mxu3 %v1048_v29 }
  0x35   :  { %575 = vmatpush.bf16.msra.mxu2 %v1039_v24 }
  0x36   :  { %203 = vmatmul.bf16.vlgmr.msra.gmra.mxu0 %v1021_v11  ;;  %555 = vmatpush.bf16.msra.mxu1 %v1032_v32 }
  0x37   :  { %686 = vmatpush.bf16.msrb.mxu0 %v1062_v45 }
  0x38   :  { %594 = vmatpush.bf16.msra.mxu3 %v1047_v31 }
  0x3a   :  { %556 = vmatpush.bf16.msra.mxu1 %v1031_v35 }
  0x46   :  { %208 = vmatmul.bf16.gmra.mxu0 %v1022_v12 }
  0xb3   :  { %v204_v34 = vpop.f32.mrf.mxu0 }
  0xb4   :  { %v205_v36 = vadd.f32 %v1081_v33, %v204_v34 }
  0xb6   :  { %v214_v37 = vmax.f32 %v205_v36, 0.0 }
  0xb8   :  { %v309_v42 = vpack.c.bf16 %v214_v37, %v214_v37  ;;  %v292_v53 = vrot.slane %v214_v37, 1  ;;  %v275_v61 = vrot.slane %v214_v37, 7 }
  0xba   :  { %v333_v46 = vunpack.c.l.b16 %v309_v42  ;;  %v1070_v42 = vld [vmem:[#allocation12 + $0x38] sm:$0xff] }
  0xbb   :  { %v206_v39 = vpop.f32.mrf.mxu0  ;;  %780 = vmatpush.bf16.msrb.mxu1 %v1070_v42 }
  0xbc   :  { %v207_v40 = vadd.f32 %v1081_v33, %v206_v39 }
  0xbe   :  { %v1315_v41 = vmax.f32 %v207_v40, 0.0 }
  0xc0   :  { %v310_v44 = vpack.c.bf16 %v1315_v41, %v1315_v41  ;;  %v293_v48 = vrot.slane %v1315_v41, 1  ;;  %v276_v57 = vrot.slane %v1315_v41, 7 }
  0xc2   :  { %v334_v47 = vunpack.c.l.b16 %v310_v44  ;;  %v299_v55 = vsel %vm296_vm0, %v292_v53, %v293_v48  ;;  %v282_v3 = vsel %vm279_vm2, %v275_v61, %v276_v57  ;;  %v1069_v44 = vld [vmem:[#allocation12 + $0x30] sm:$0xff] }
  0xc3   :  { %v209_v49 = vpop.f32.mrf.mxu0  ;;  %v313_v60 = vpack.c.bf16 %v299_v55, %v299_v55  ;;  %v306_v13 = vpack.c.bf16 %v282_v3, %v282_v3  ;;  %781 = vmatpush.bf16.msrb.mxu1 %v1069_v44  ;;  %v701_v55 = vunpack.c.h.bf16 %v111_v52  ;;  %v1056_v3 = vld [vmem:[#allocation10 + $0x8] sm:$0xff] }
  0xc4   :  { %v210_v50 = vadd.f32 %v1081_v33, %v209_v49  ;;  %v337_v51 = vpack.c.b16 %v334_v47, %v333_v46  ;;  %v1068_v46 = vld [vmem:[#allocation12 + $0x28] sm:$0xff]  ;;  %v1061_v47 = vld [vmem:[#allocation10 + $0x30] sm:$0xff]  ;;  %v1066_v49 = vld [vmem:[#allocation12 + $0x18] sm:$0xff] }
  0xc5   :  { %v345_v6 = vunpack.c.l.b16 %v313_v60  ;;  %v322_v25 = vunpack.c.l.b16 %v306_v13  ;;  %687 = vmatpush.bf16.msrb.mxu0 %v1061_v47  ;;  %705 = vst [vmem:[#allocation3 + $0x8] sm:$0xff] %v701_v55 }
  0xc6   :  { %v216_v54 = vmax.f32 %v210_v50, 0.0  ;;  %576 = vmatmul.bf16.vlgmr.msra.gmra.mxu2 %v337_v51  ;;  %v1059_v50 = vld [vmem:[#allocation10 + $0x20] sm:$0xff]  ;;  %v1065_v51 = vld [vmem:[#allocation12 + $0x10] sm:$0xff] }
  0xc7   :  { %782 = vmatpush.bf16.msrb.mxu1 %v1068_v46 }
  0xc8   :  { %v294_v56 = vrot.slane %v216_v54, 1  ;;  %v311_v8 = vpack.c.bf16 %v216_v54, %v216_v54  ;;  %v277_v27 = vrot.slane %v216_v54, 7  ;;  %v700_v54 = vunpack.c.l.bf16 %v111_v52 }
  0xca   :  { %v298_v59 = vsel %vm296_vm0, %v293_v48, %v294_v56  ;;  %v335_v14 = vunpack.c.l.b16 %v311_v8  ;;  %v1060_v48 = vld [vmem:[#allocation10 + $0x28] sm:$0xff]  ;;  %704 = vst [vmem:[#allocation3] sm:$0xff] %v700_v54 }
  0xcb   :  { %v211_v62 = vpop.f32.mrf.mxu0  ;;  %v302_v63 = vsel %vm289_vm1, 0.0, %v298_v59  ;;  %783 = vmatpush.bf16.msrb.mxu1 %v1067_v43  ;;  %688 = vmatpush.bf16.msrb.mxu0 %v1060_v48  ;;  %v1064_v59 = vld [vmem:[#allocation12 + $0x8] sm:$0xff] }
  0xcc   :  { %v212_v1 = vadd.f32 %v1081_v33, %v211_v62  ;;  %v314_v2 = vpack.c.bf16 %v302_v63, %v302_v63  ;;  %v281_v33 = vsel %vm279_vm2, %v276_v57, %v277_v27  ;;  %v1057_v63 = vld [vmem:[#allocation10 + $0x10] sm:$0xff] }
  0xcd   :  { %v286_v35 = vsel %vm273_vm5, 0.0, %v281_v33 }
  0xce   :  { %v217_v5 = vmax.f32 %v212_v1, 0.0  ;;  %v346_v7 = vunpack.c.l.b16 %v314_v2  ;;  %v307_v38 = vpack.c.bf16 %v286_v35, %v286_v35  ;;  %v1083_v35 = vld [vmem:[%s1365_s8] ss:$0 sm:$0xff]  ;;  %s806_s8 = sshll.u32 %s1366_s9, 4  ;;  %s807_s8 = int_to_ptr.hbm [resolvable:$true] %s806_s8 }
  0xcf   :  { %784 = vmatpush.bf16.msrb.mxu1 %v1066_v49  ;;  %689 = vmatpush.bf16.msrb.mxu0 %v1059_v50 }
  0xd0   :  { %v278_v9 = vrot.slane %v217_v5, 7  ;;  %v295_v10 = vrot.slane %v217_v5, 1  ;;  %v349_v11 = vpack.c.b16 %v346_v7, %v345_v6  ;;  %v312_v12 = vpack.c.bf16 %v217_v5, %v217_v5 }
  0xd1   :  { %v323_v40 = vunpack.c.l.b16 %v307_v38  ;;  %v708_v4 = vld [vmem:[#allocation3] ss:$2 sm:$0xff] }
  0xd2   :  { %595 = vmatmul.bf16.vlgmr.msra.gmra.mxu3 %v349_v11  ;;  %v336_v15 = vunpack.c.l.b16 %v312_v12  ;;  %v283_v16 = vsel %vm279_vm2, %v278_v9, %v275_v61  ;;  %v300_v17 = vsel %vm296_vm0, %v295_v10, %v292_v53  ;;  %v297_v22 = vsel %vm296_vm0, %v294_v56, %v295_v10  ;;  %v113_v53 = vld [vmem:[#allocation4 + $0x8] sm:$0xff]   ;;  %v1082_v61 = vld [vmem:[%s1361_s4] ss:$0 sm:$0xff] }
  0xd3   :  { %v284_v18 = vsel %vm271_vm3, 0.0, %v283_v16  ;;  %v304_v23 = vsel %vm291_vm4, 0.0, %v300_v17  ;;  %v315_v29 = vpack.c.bf16 %v297_v22, %v297_v22  ;;  %v280_v34 = vsel %vm279_vm2, %v277_v27, %v278_v9  ;;  %785 = vmatpush.bf16.msrb.mxu1 %v1065_v51  ;;  %690 = vmatpush.bf16.msrb.mxu0 %v1058_v58  ;;  %v1055_v9 = vld [vmem:[#allocation10] sm:$0xff] }
  0xd4   :  { %v338_v20 = vpack.c.b16 %v336_v15, %v335_v14  ;;  %v305_v21 = vpack.c.bf16 %v284_v18, %v284_v18  ;;  %v316_v30 = vpack.c.bf16 %v304_v23, %v304_v23  ;;  %v308_v37 = vpack.c.bf16 %v280_v34, %v280_v34 }
  0xd5   :  { %v347_v31 = vunpack.c.l.b16 %v315_v29  ;;  %v702_v56 = vunpack.c.l.bf16 %v113_v53  ;;  %v703_v57 = vunpack.c.h.bf16 %v113_v53 }
  0xd6   :  { %581 = vmatmul.bf16.gmra.mxu2 %v338_v20  ;;  %v321_v24 = vunpack.c.l.b16 %v305_v21  ;;  %v348_v32 = vunpack.c.l.b16 %v316_v30  ;;  %v324_v39 = vunpack.c.l.b16 %v308_v37  ;;  %v1084_v37 = vld [vmem:[%s1363_s6] ss:$0 sm:$0xff]  ;;  %s1245_s6 = smov 128  }
  0xd7   :  { %706 = vst [vmem:[#allocation3 + $0x10] sm:$0xff] %v702_v56  ;;  %786 = vmatpush.bf16.msrb.mxu1 %v1064_v59  ;;  %691 = vmatpush.bf16.msrb.mxu0 %v1057_v63 }
  0xd8   :  { %v325_v28 = vpack.c.b16 %v322_v25, %v321_v24  ;;  %v350_v36 = vpack.c.b16 %v348_v32, %v347_v31  ;;  %v326_v41 = vpack.c.b16 %v324_v39, %v323_v40  ;;  %707 = vst [vmem:[#allocation3 + $0x18] sm:$0xff] %v703_v57 }
  0xda   :  { %557 = vmatmul.bf16.vlgmr.msra.gmra.mxu1 %v325_v28 }
  0xdb   :  { %787 = vmatpush.bf16.msrb.mxu1 %v1063_v0  ;;  %692 = vmatpush.bf16.msrb.mxu0 %v1056_v3 }
  0xdf   :  { %v710_v6 = vld [vmem:[#allocation3 + $0x10] ss:$2 sm:$0xff]  ;;  %693 = vmatpush.bf16.msrb.mxu0 %v1055_v9 }
  0xe0   :  { %v711_v8 = vpack.c.bf16 %v710_v6, %v708_v4 }
  0xe2   :  { %600 = vmatmul.bf16.gmra.mxu3 %v350_v36 }
  0xea   :  { %562 = vmatmul.bf16.gmra.mxu1 %v326_v41 }
  0xfa   :  { %788 = vmatmul.bf16.vlgmr.msrb.gmra.mxu1 %v711_v8 }
 0x149   :  { %v577_v60 = vpop.f32.mrf.mxu2 }
 0x151   :  { %v579_v10 = vpop.f32.mrf.mxu2 }
 0x155   :  { %v596_v62 = vpop.f32.mrf.mxu3 }
 0x157   :  { %v558_v1 = vpop.f32.mrf.mxu1 }
 0x158   :  { %v559_v2 = vadd.f32 %v1082_v61, %v558_v1 }
 0x159   :  { %v582_v18 = vpop.f32.mrf.mxu2 }
 0x15a   :  { %v578_v5 = vadd.f32 %v577_v60, %v559_v2 }
 0x15c   :  { %v597_v7 = vadd.f32 %v596_v62, %v578_v5 }
 0x15d   :  { %v598_v12 = vpop.f32.mrf.mxu3 }
 0x15e   :  { %v606_v11 = vmax.f32 %v597_v7, 0.0 }
 0x15f   :  { %v560_v13 = vpop.f32.mrf.mxu1 }
 0x160   :  { %610 = vst [vmem:[#allocation2] sm:$0xff] %v606_v11  ;;  %v561_v14 = vadd.f32 %v1082_v61, %v560_v13 }
 0x161   :  { %v584_v27 = vpop.f32.mrf.mxu2 }
 0x162   :  { %v580_v15 = vadd.f32 %v579_v10, %v561_v14 }
 0x164   :  { %v599_v16 = vadd.f32 %v598_v12, %v580_v15 }
 0x165   :  { %v601_v21 = vpop.f32.mrf.mxu3 }
 0x166   :  { %v607_v17 = vmax.f32 %v599_v16, 0.0 }
 0x167   :  { %v563_v19 = vpop.f32.mrf.mxu1 }
 0x168   :  { %611 = vst [vmem:[#allocation2 + $0x8] sm:$0xff] %v607_v17  ;;  %v564_v20 = vadd.f32 %v1082_v61, %v563_v19 }
 0x16a   :  { %v583_v22 = vadd.f32 %v582_v18, %v564_v20 }
 0x16c   :  { %v602_v23 = vadd.f32 %v601_v21, %v583_v22 }
 0x16d   :  { %v603_v29 = vpop.f32.mrf.mxu3 }
 0x16e   :  { %v608_v24 = vmax.f32 %v602_v23, 0.0 }
 0x16f   :  { %v565_v25 = vpop.f32.mrf.mxu1  ;;  %v614_v32 = vld [vmem:[#allocation2] ss:$2 sm:$0xff] }
 0x170   :  { %612 = vst [vmem:[#allocation2 + $0x10] sm:$0xff] %v608_v24  ;;  %v566_v26 = vadd.f32 %v1082_v61, %v565_v25 }
 0x172   :  { %v585_v28 = vadd.f32 %v584_v27, %v566_v26 }
 0x174   :  { %v604_v30 = vadd.f32 %v603_v29, %v585_v28 }
 0x176   :  { %v609_v31 = vmax.f32 %v604_v30, 0.0 }
 0x177   :  { %v789_v36 = vpop.f32.mrf.mxu1 }
 0x178   :  { %613 = vst [vmem:[#allocation2 + $0x18] sm:$0xff] %v609_v31  ;;  %v790_v38 = vadd.f32 %v1083_v35, %v789_v36 }
 0x17f   :  { %v616_v33 = vld [vmem:[#allocation2 + $0x10] ss:$2 sm:$0xff]  ;;  %v791_v44 = vpop.f32.mrf.mxu1 }
 0x180   :  { %v617_v34 = vpack.c.bf16 %v616_v33, %v614_v32  ;;  %v792_v46 = vadd.f32 %v1083_v35, %v791_v44 }
 0x182   :  { %694 = vmatmul.bf16.vlgmr.msrb.gmra.mxu0 %v617_v34 }
 0x1ff   :  { %v695_v39 = vpop.f32.mrf.mxu0 }
 0x200   :  { %v696_v40 = vadd.f32 %v1084_v37, %v695_v39 }
 0x202   :  { %v794_v41 = vadd.f32 %v790_v38, %v696_v40 }
 0x204   :  { %v796_v42 = vmax.f32 %v794_v41, 0.0 }
 0x206   :  { %798 = vst [vmem:[#allocation13] sm:$0xff] %v796_v42 }
 0x207   :  { %v697_v45 = vpop.f32.mrf.mxu0 }
 0x208   :  { %v698_v47 = vadd.f32 %v1084_v37, %v697_v45 }
 0x20a   :  { %v795_v43 = vadd.f32 %v792_v46, %v698_v47 }
 0x20c   :  { %v797_v48 = vmax.f32 %v795_v43, 0.0 }
 0x20e   :  { %799 = vst [vmem:[#allocation13 + $0x8] sm:$0xff] %v797_v48 }
 0x20f   :  { %812 = dma.vmem_to_hbm [thread:$0]  %s805_s17, 256, %s807_s8, [#allocation6], %s1245_s6, %s1245_s6, %s1246_s20  }
 0x210   :  { %1235 = dma.done.wait [#allocation6], 256  }
 0x211   :  { %1236 = vsyncadd [#allocation6], 4294967040 }
 0x212   :  { %817 = vsyncpa [#allocation5], 1 }
 0x213   :  { %818 = vsyncpa [#allocation8], 1 }
 0x214   :  { %819 = vsyncpa [#allocation11], 1 }
 0x215   :  { %820 = vsyncpa [#allocation6], 1 }

</bundles_post_ra>
